<compile_context>
chip_gen: v5e
topology: v5e:2x2
jax: 0.10.0
libtpu: 0.0.40
codegen_flags: <defaults>
</compile_context>

<pallas_src>
import math

import jax
import jax.numpy as jnp
from jax import lax
from jax.experimental import pallas as pl
from jax.experimental.pallas import tpu as pltpu


def _round_up(a: int, b: int) -> int:
    return ((a + b - 1) // b) * b


def _tpu_caps():
    """Per-generation (row-tile cap, vmem_limit_bytes, core_splits)."""
    vmem_phys = 64 << 20  # conservative default (v7x-class)
    try:
        info = pltpu.get_tpu_info()
        vmem_phys = int(getattr(info, "vmem_capacity_bytes", vmem_phys))
    except Exception:  # e.g. interpret mode / query unavailable
        pass
    if vmem_phys > (96 << 20):
        # v5e / v6e: 128 MiB physical VMEM, single TensorCore -> one core split,
        # large streaming tiles, explicit vmem limit well above the scoped default.
        return 2048, 96 << 20, 1
    # v7x-class: 64 MiB physical VMEM, 2 TensorCores (megacore) -> 2 core splits.
    return 1024, 48 << 20, 2


# ----------------------------------------------------------------------------
# Kernel 1: stats-only pass.  acc = x @ W (f32 MXU acc, never stored);
# per-column [sum; sumsq] accumulated in a grid-resident (8, cols) f32 block,
# one per core split so a megacore can shard the leading "parallel" axis.
# ----------------------------------------------------------------------------
def _stats_call(x_packed, w_blk, *, tm, num_i, nc, cols, vmem_limit):
    _, pcin = x_packed.shape

    def kernel(x_ref, w_ref, st_ref):
        @pl.when(pl.program_id(1) == 0)
        def _():
            st_ref[...] = jnp.zeros_like(st_ref)

        acc = jnp.dot(x_ref[...], w_ref[...], preferred_element_type=jnp.float32)
        # Row-slice accumulator updates (no concat / zero-fill materialization).
        # NOTE: the column reduce could be routed through the MXU
        # (ones(1,tm) @ acc) per the review, but after the stats-only restructure
        # this kernel only streams x (tiny) and is far from the bottleneck.
        st_ref[0:1, :] += jnp.sum(acc, axis=0, keepdims=True)
        st_ref[1:2, :] += jnp.sum(acc * acc, axis=0, keepdims=True)

    return pl.pallas_call(
        kernel,
        out_shape=jax.ShapeDtypeStruct((nc * 8, cols), jnp.float32),
        grid_spec=pltpu.PrefetchScalarGridSpec(
            num_scalar_prefetch=0,
            grid=(nc, num_i),
            in_specs=[
                pl.BlockSpec((tm, pcin), lambda c, i: (c * num_i + i, 0)),
                pl.BlockSpec((pcin, cols), lambda c, i: (0, 0),
                             pipeline_mode=pl.Buffered(1)),
            ],
            out_specs=pl.BlockSpec((8, cols), lambda c, i: (c, 0)),
        ),
        compiler_params=pltpu.CompilerParams(
            # TODO(synk): on v7x verify the leading axis really core-shards; if not,
            # switch it to pltpu.CORE_PARALLEL / pl.core_map.
            dimension_semantics=("parallel", "arbitrary"),
            vmem_limit_bytes=vmem_limit,
        ),
    )(x_packed, w_blk)


# ----------------------------------------------------------------------------
# Kernel 2: recompute acc = x @ W (identical f32 acc as kernel 1) and apply the
# fused BN affine + ReLU:  relu(acc * scale + shift).  The only big HBM store.
# ----------------------------------------------------------------------------
def _convt_bn_relu_call(x_packed, w_blk, scale_row, shift_row, *, tm, vmem_limit):
    r_pad, pcin = x_packed.shape
    cols = w_blk.shape[1]

    def kernel(x_ref, w_ref, sc_ref, sh_ref, o_ref):
        acc = jnp.dot(x_ref[...], w_ref[...], preferred_element_type=jnp.float32)
        o_ref[...] = jnp.maximum(acc * sc_ref[...] + sh_ref[...], 0.0)

    return pl.pallas_call(
        kernel,
        out_shape=jax.ShapeDtypeStruct((r_pad, cols), jnp.float32),
        grid_spec=pltpu.PrefetchScalarGridSpec(
            num_scalar_prefetch=0,
            grid=(r_pad // tm,),
            in_specs=[
                pl.BlockSpec((tm, pcin), lambda i: (i, 0)),
                pl.BlockSpec((pcin, cols), lambda i: (0, 0),
                             pipeline_mode=pl.Buffered(1)),
                pl.BlockSpec((1, cols), lambda i: (0, 0),
                             pipeline_mode=pl.Buffered(1)),
                pl.BlockSpec((1, cols), lambda i: (0, 0),
                             pipeline_mode=pl.Buffered(1)),
            ],
            out_specs=pl.BlockSpec((tm, cols), lambda i: (i, 0)),
        ),
        compiler_params=pltpu.CompilerParams(
            dimension_semantics=("parallel",),
            vmem_limit_bytes=vmem_limit,
        ),
    )(x_packed, w_blk, scale_row, shift_row)


# ----------------------------------------------------------------------------
# Full UpconvBlock forward
# ----------------------------------------------------------------------------
def upconv_block(x_nchw, weight, bias, gamma, beta, eps=1e-5):
    """x_nchw: (N, Cin, H, W); weight: (Cin, Cout, 2, 2) [PyTorch ConvTranspose2d layout]."""
    # `bias` is intentionally unused: under training-mode BatchNorm the per-channel
    # conv bias is exactly cancelled by the mean subtraction (eval-mode running
    # stats would need it re-added).
    del bias

    N, Cin, H, W = x_nchw.shape
    Cout = weight.shape[1]
    M = N * H * W
    Kout = 4 * Cout

    row_cap, vmem_limit, nc = _tpu_caps()

    # Lane packing: pack `p` flat pixels per stored row so the streamed columns are
    # lcm(Kout, 128) wide -> lane-dense, zero padding waste (Kout is always a
    # multiple of 4).  Falls back to plain 128-padding only if the block-diagonal
    # weight would get too large (tiny Cout with huge Cin).
    p = 128 // math.gcd(Kout, 128)
    if p * Cin > 2048:
        p = 1
    cols = p * Kout if (p * Kout) % 128 == 0 else _round_up(p * Kout, 128)
    pcin = p * Cin

    # NCHW -> NHWC so input channels sit on the lane axis (bf16: halves x traffic).
    # TODO(synk): feed NHWC from the producer to drop this transpose (matters when
    # Cin is large relative to Cout).
    x = jnp.transpose(x_nchw, (0, 2, 3, 1)).reshape(M, Cin).astype(jnp.bfloat16)

    # (Cin, Cout, 2, 2) -> (Cin, 2, 2, Cout) -> (Cin, 4*Cout); block-diagonalize for
    # the row packing: W_blk = kron(I_p, W_small), shape (p*Cin, p*Kout).
    w_small = jnp.transpose(weight, (0, 2, 3, 1)).reshape(Cin, Kout).astype(jnp.float32)
    w_cols = jnp.kron(jnp.eye(p, dtype=jnp.float32), w_small) if p > 1 else w_small
    if w_cols.shape[1] < cols:
        w_cols = jnp.pad(w_cols, ((0, 0), (0, cols - w_cols.shape[1])))
    w_blk = w_cols.astype(jnp.bfloat16)

    # Row tiling (multiples of 16 for bf16 sublane packing), clamped so that the
    # double-buffered streams + resident weight fit the per-generation VMEM budget.
    R = -(-M // p)  # packed rows
    tm = min(row_cap, _round_up(max(R // max(nc, 1), 1), 16))

    def _tile_bytes(t):
        return 2 * t * pcin * 2 + 2 * t * cols * 4 + pcin * cols * 2 + 2 * cols * 4

    while tm > 16 and _tile_bytes(tm) > vmem_limit // 2:
        tm = max(16, _round_up(tm // 2, 16))

    R_pad = _round_up(R, nc * tm)
    num_i = R_pad // (nc * tm)

    total_flat = R_pad * p
    if total_flat > M:
        x = jnp.pad(x, ((0, total_flat - M), (0, 0)))  # zero rows -> zero outputs (no bias)
    x_packed = x.reshape(R_pad, pcin)

    # ---- Pass 1: stats only (no y store). ----
    stats = _stats_call(x_packed, w_blk, tm=tm, num_i=num_i, nc=nc, cols=cols,
                        vmem_limit=vmem_limit)
    stats = stats.reshape(nc, 8, cols)
    col_sum = stats[:, 0, :].sum(axis=0)[: p * Kout]
    col_sq = stats[:, 1, :].sum(axis=0)[: p * Kout]
    # Column (q, dy, dx, c) -> channel c.
    ch_sum = col_sum.reshape(p * 4, Cout).sum(axis=0)
    ch_sq = col_sq.reshape(p * 4, Cout).sum(axis=0)
    count = jnp.float32(4 * M)  # N * 2H * 2W elements per channel
    mean = ch_sum / count
    # TODO(synk): single-pass E[y^2]-E[y]^2 can cancel badly if |mean| >> std; a
    # Welford-style combine of per-core partials would be more robust.
    var = jnp.maximum(ch_sq / count - mean * mean, 0.0)
    inv_std = lax.rsqrt(var + eps)
    scale_ch = gamma.astype(jnp.float32) * inv_std
    shift_ch = beta.astype(jnp.float32) - mean * scale_ch
    scale_row = jnp.pad(jnp.tile(scale_ch, 4 * p), (0, cols - p * Kout)).reshape(1, cols)
    shift_row = jnp.pad(jnp.tile(shift_ch, 4 * p), (0, cols - p * Kout)).reshape(1, cols)

    # ---- Pass 2: recompute x@W (identical f32 acc) + fused BN affine + ReLU. ----
    out_flat = _convt_bn_relu_call(x_packed, w_blk, scale_row, shift_row,
                                   tm=tm, vmem_limit=vmem_limit)  # (R_pad, cols) f32

    # Unpack rows (contiguous reshape) and do ONE combined sub-pixel + NHWC->NCHW
    # transpose in XLA.
    # TODO(synk): this transpose is the remaining extra HBM pass; drop it if the
    # consumer accepts NHWC, or emit bf16 here if downstream tolerates it.
    out_lin = out_flat[:, : p * Kout].reshape(R_pad * p, Kout)[:M]
    out = out_lin.reshape(N, H, W, 2, 2, Cout)
    out = jnp.transpose(out, (0, 5, 1, 3, 2, 4)).reshape(N, Cout, 2 * H, 2 * W)
    return out
    # TODO(synk): BatchNorm2d running_mean/running_var buffer updates (training side
    # effect) are not materialized; only the forward tensor is produced.


# ----------------------------------------------------------------------------
# Pure-jnp f32 reference (independent of the Pallas path)
# ----------------------------------------------------------------------------
def _reference(x_nchw, weight, bias, gamma, beta, eps=1e-5):
    N, Cin, H, W = x_nchw.shape
    Cout = weight.shape[1]
    x = jnp.transpose(x_nchw, (0, 2, 3, 1)).astype(jnp.float32)
    t = jnp.einsum("nhwi,iojk->nhjwko", x, weight.astype(jnp.float32))
    y = t.reshape(N, 2 * H, 2 * W, Cout) + bias.astype(jnp.float32)
    mean = jnp.mean(y, axis=(0, 1, 2))
    var = jnp.mean((y - mean) ** 2, axis=(0, 1, 2))
    yhat = (y - mean) / jnp.sqrt(var + eps)
    out = jnp.maximum(yhat * gamma + beta, 0.0)
    return jnp.transpose(out, (0, 3, 1, 2))


if __name__ == "__main__":
    N, Cin, Cout, H, W = 2, 4, 8, 16, 16

    key = jax.random.PRNGKey(0)
    k_x, k_w, k_b, k_g, k_be = jax.random.split(key, 5)

    x = jax.random.normal(k_x, (N, Cin, H, W), dtype=jnp.float32)
    # ConvTranspose2d weight shape: (in_chans, out_chans, kH, kW)
    weight = jax.random.normal(k_w, (Cin, Cout, 2, 2), dtype=jnp.float32) * 0.2
    bias = jax.random.normal(k_b, (Cout,), dtype=jnp.float32) * 0.1
    gamma = 1.0 + 0.1 * jax.random.normal(k_g, (Cout,), dtype=jnp.float32)
    beta = 0.1 * jax.random.normal(k_be, (Cout,), dtype=jnp.float32)

    out = upconv_block(x, weight, bias, gamma, beta)
    out = jax.block_until_ready(out)

    ref = _reference(x, weight, bias, gamma, beta)
    assert out.shape == (N, Cout, 2 * H, 2 * W), out.shape
    max_err = float(jnp.max(jnp.abs(out - ref)))
    # bf16 matmul inputs -> loosened tolerance vs the pure-f32 reference.
    assert jnp.allclose(out, ref, rtol=5e-2, atol=5e-2), max_err

    print("KERNEL_OK")
</pallas_src>

<mosaic_0001>
module attributes {stable_mosaic.version = 11 : i64} {
  func.func @kernel(%arg0: i32, %arg1: i32, %arg2: memref<64x16xbf16, #tpu.memory_space<vmem>>, %arg3: memref<16x128xbf16, #tpu.memory_space<vmem>>, %arg4: memref<8x128xf32, #tpu.memory_space<vmem>>) attributes {dimension_semantics = [#tpu.dimension_semantics<parallel>, #tpu.dimension_semantics<arbitrary>], iteration_bounds = array<i64: 2, 1>, scalar_prefetch = 0 : i64, scratch_operands = 0 : i64, tpu.core_type = #tpu.core_type<tc>, window_params = [{transform_indices = @transform_0, window_bounds = array<i64: 64, 16>}, {pipeline_mode = #tpu.pipeline_mode<synchronous>, transform_indices = @transform_1, window_bounds = array<i64: 16, 128>}, {transform_indices = @transform_2, window_bounds = array<i64: 8, 128>}]} {
    %c0_i32 = arith.constant 0 : i32
    %0 = arith.cmpi eq, %arg1, %c0_i32 : i32
    %1 = arith.extui %0 : i1 to i32
    %c0_i32_0 = arith.constant 0 : i32
    %2 = arith.cmpi ne, %1, %c0_i32_0 : i32
    scf.if %2 {
      %cst_13 = arith.constant 0.000000e+00 : f32
      %17 = vector.broadcast %cst_13 : f32 to vector<8x128xf32>
      %c0_14 = arith.constant 0 : index
      %c0_15 = arith.constant 0 : index
      %18 = vector.load %arg4[%c0_14, %c0_15] : memref<8x128xf32, #tpu.memory_space<vmem>>, vector<8x128xf32>
      tpu.vector_store %arg4[%c0_14, %c0_15], %17 {strides = array<i32>} : memref<8x128xf32, #tpu.memory_space<vmem>>, vector<8x128xf32>,
    } else {
    }
    %c0 = arith.constant 0 : index
    %c0_1 = arith.constant 0 : index
    %3 = vector.load %arg2[%c0, %c0_1] : memref<64x16xbf16, #tpu.memory_space<vmem>>, vector<64x16xbf16>
    %c0_2 = arith.constant 0 : index
    %c0_3 = arith.constant 0 : index
    %4 = vector.load %arg3[%c0_2, %c0_3] : memref<16x128xbf16, #tpu.memory_space<vmem>>, vector<16x128xbf16>
    %cst = arith.constant dense<0.000000e+00> : vector<64x128xf32>
    %5 = tpu.matmul %3, %4, %cst {dimension_numbers = #tpu.dot_dimension_numbers<[1], [0], [0], [1], [0, 0, 1, 1], [], []>} : vector<64x16xbf16>, vector<16x128xbf16>, vector<64x128xf32> -> vector<64x128xf32>
    %c0_4 = arith.constant 0 : index
    %c0_5 = arith.constant 0 : index
    %6 = vector.load %arg4[%c0_4, %c0_5] : memref<8x128xf32, #tpu.memory_space<vmem>>, vector<1x128xf32>
    %cst_6 = arith.constant dense<0.000000e+00> : vector<128xf32>
    %7 = vector.multi_reduction <add>, %5, %cst_6 [0] : vector<64x128xf32> to vector<128xf32>
    %8 = vector.shape_cast %7 : vector<128xf32> to vector<1x128xf32>
    %9 = arith.addf %6, %8 : vector<1x128xf32>
    %c0_7 = arith.constant 0 : index
    %c0_8 = arith.constant 0 : index
    %10 = vector.load %arg4[%c0_7, %c0_8] : memref<8x128xf32, #tpu.memory_space<vmem>>, vector<1x128xf32>
    tpu.vector_store %arg4[%c0_7, %c0_8], %9 {strides = array<i32>} : memref<8x128xf32, #tpu.memory_space<vmem>>, vector<1x128xf32>,
    %c1 = arith.constant 1 : index
    %c0_9 = arith.constant 0 : index
    %11 = vector.load %arg4[%c1, %c0_9] : memref<8x128xf32, #tpu.memory_space<vmem>>, vector<1x128xf32>
    %12 = arith.mulf %5, %5 : vector<64x128xf32>
    %cst_10 = arith.constant dense<0.000000e+00> : vector<128xf32>
    %13 = vector.multi_reduction <add>, %12, %cst_10 [0] : vector<64x128xf32> to vector<128xf32>
    %14 = vector.shape_cast %13 : vector<128xf32> to vector<1x128xf32>
    %15 = arith.addf %11, %14 : vector<1x128xf32>
    %c1_11 = arith.constant 1 : index
    %c0_12 = arith.constant 0 : index
    %16 = vector.load %arg4[%c1_11, %c0_12] : memref<8x128xf32, #tpu.memory_space<vmem>>, vector<1x128xf32>
    tpu.vector_store %arg4[%c1_11, %c0_12], %15 {strides = array<i32>} : memref<8x128xf32, #tpu.memory_space<vmem>>, vector<1x128xf32>,
    return
  }
  func.func @transform_0(%arg0: i32, %arg1: i32) -> (i32, i32) {
    %c1_i32 = arith.constant 1 : i32
    %0 = arith.muli %arg0, %c1_i32 : i32
    %1 = arith.addi %0, %arg1 : i32
    %c0_i32 = arith.constant 0 : i32
    %c0_i32_0 = arith.constant 0 : i32
    return %1, %c0_i32 : i32, i32
  }
  func.func @transform_1(%arg0: i32, %arg1: i32) -> (i32, i32) {
    %c0_i32 = arith.constant 0 : i32
    %c0_i32_0 = arith.constant 0 : i32
    %c0_i32_1 = arith.constant 0 : i32
    return %c0_i32, %c0_i32_0 : i32, i32
  }
  func.func @transform_2(%arg0: i32, %arg1: i32) -> (i32, i32) {
    %c0_i32 = arith.constant 0 : i32
    %c0_i32_0 = arith.constant 0 : i32
    return %arg0, %c0_i32 : i32, i32
  }
}

</mosaic_0001>

<bundles_post_ra>
// kernel: tpu_custom_call.1
= control target key start
LH: loop header
LB: loop body
LE: loop exit
PB: predicated region body
PF: predicated region fallthrough
CT: control target
= control target key end

     0   :  { %7 = vsyncpa [#allocation3], 0  ;;  %s678_s0 = inlined_call_operand.vmem [shape: bf16[128,16], index: 0, kind: input, shape index: {}]   ;;  %s679_s1 = inlined_call_operand.vmem [shape: bf16[16,128], index: 1, kind: input, shape index: {}]   ;;  %s680_s2 = inlined_call_operand.hbm [shape: f32[16,128], index: 2, kind: output, shape index: {}]  }
   0x1   :  { %9 = vsyncpa [#allocation3 + $0x1], 0  ;;  %s566_s9 = smov 0   ;;  %s568_s10 = smov 0  }
   0x2   :  { %s570_s11 = smov 0   ;;  %s572_s12 = smov 0  }
   0x3   :  { %s574_s13 = smov 0   ;;  %s576_s14 = smov 0  }
   0x4 LB: > { %s370_s15 = sadd.s32 4294967295, %s548_s14   ;;  %s371_s16 = sadd.s32 4294967294, %s548_s14   ;;  %s548_s14 = sphi %s576_s14, %s15_s14   ;;  %s544_s13 = sphi %s574_s13, %s687_s13   ;;  %s540_s12 = sphi %s572_s12, %s686_s12   ;;  %s536_s11 = sphi %s570_s11, %s685_s11   ;;  %s532_s10 = sphi %s568_s10, %s684_s10   ;;  %s528_s9 = sphi %s566_s9, %s683_s9  }
   0x5   : > { %s27_s17 = sadd.s32 1, %s544_s13  ;;  %s83_s18 = sadd.s32 1, %s536_s11 }
   0x6   : > { %p29_p0 = scmp.ge.s32.totalorder %s27_s17, 2  ;;  %p93_p1 = scmp.ne.s32.totalorder %s536_s11, %s532_s10 }
   0x7   : > { %p94_p2 = scmp.eq.s32.totalorder %s370_s15, 1  ;;  %p99_p3 = scmp.ne.s32.totalorder %s532_s10, %s528_s9 }
   0x8   : > { %s689_s17 = smov (%p29_p0, %s27_s17), 0  ;;  %p100_p5 = scmp.eq.s32.totalorder %s371_s16, 1 }
   0x9   : > { %p604_p4 = por %p94_p2, %p93_p1  ;;  %s80_s20 = ssub.s32 %s544_s13, %s689_s17 }
   0xa   : > { %p374_p6 = scmp.ge.s32.totalorder %s548_s14, 1  ;;  %p81_p7 = scmp.eq.s32.totalorder %s80_s20, 0 }
   0xb   : > { %p611_p8 = por %p100_p5, %p99_p3  ;;  %p132_p9 = scmp.lt.s32.totalorder %s548_s14, 3 }
   0xc   : > { %s617_s22 = scalar_select %p81_p7, %s536_s11, %s83_s18  }
   0xd   : > { %p133_p10 = pnand %p374_p6, %p132_p9 }
   0xe   : > { %s622_s25 = sshll.u32 (!%p133_p10), %s540_s12, 3  ;;  %s152_s3 = sand.u32 (!%p133_p10), 1, %s532_s10  }
   0xf   : > { %136 = sbr.rel (%p133_p10) target bundleno = 192 (0xc0), region = 28  ;;  %p157_p11 = scmp.lt.s32.totalorder (!%p133_p10), %s622_s25, 15 }
  0x10   : > { %s375_s4 = sshll.u32 (!%p133_p10), %s152_s3, 3  ;;  %s298_s8 = scalar_lea.hbm (!%p133_p10), %s680_s2, %s622_s25 }
  0x11   : > { %s632_s5 = scalar_lea.vmem (!%p133_p10), [#allocation2], %s375_s4  ;;  %s302_s15 = sshll.u32 (!%p133_p10), %s298_s8, 4  ;;  %s303_s15 = int_to_ptr.hbm [resolvable:$true] %s302_s15 }
  0x12   : > { %s300_s12 = sshll.u32 (!%p133_p10), %s632_s5, 4  ;;  %s288_s16 = scalar_lea.sflag (!%p133_p10), [#allocation3], %s152_s3  ;;  %s301_s12 = int_to_ptr.vmem [resolvable:$true] %s300_s12 }
  0x13   : > { %s484_s18 = sshra.s32 (!%p133_p10), %s303_s15, 4  ;;  %s485_s18 = int_to_ptr.hbm [resolvable:$true] %s484_s18 }
  0x14   : > { %v410_v0 = vld [vmem:[%s679_s1] sm:$0xff]  ;;  %s158_s26 = scalar_select %p157_p11, %s622_s25, 15  ;;  %vm205_vm0 = vcmask 130048   ;;  %v550_v5 = vmov 0.0  }
  0x15   : > { %225 = vmatpush.bf16.msra.mxu0 %v410_v0  ;;  %411 = vmatpush.bf16.msra.mxu1 %v410_v0  ;;  %168 = vst [vmem:[%s632_s5] sm:$0xff] %v550_v5  ;;  %s486_s20 = scalar_lea.hbm %s485_s18, 8  ;;  %s490_s25 = scalar_lea.hbm %s680_s2, 16 }
  0x16   : > { %412 = vmatpush.bf16.msra.mxu2 %v410_v0  ;;  %413 = vmatpush.bf16.msra.mxu3 %v410_v0  ;;  %s377_s27 = sshll.u32 %s158_s26, 2  ;;  %p487_p12 = scmp.ne.s32.totalorder %s485_s18, %s486_s20 }
  0x17   : > { %s160_s30 = scalar_lea.vmem %s678_s0, %s377_s27  ;;  %p491_p1 = scmp.lt.s32.totalorder %s485_s18, %s680_s2 }
  0x18   : > { %v406_v1 = vld [vmem:[%s160_s30] sm:$0xff]  ;;  %v407_v2 = vld [vmem:[%s160_s30 + $0x8] sm:$0xff]  ;;  %v408_v3 = vld [vmem:[%s160_s30 + $0x10] sm:$0xff]  ;;  %p488_p13 = pnand %p487_p12, %p604_p4  ;;  %p492_p2 = scmp.lt.s32.totalorder %s490_s25, %s486_s20 }
  0x19   : > { %v409_v4 = vld [vmem:[%s160_s30 + $0x18] sm:$0xff]  ;;  %398 = vmatmul.msk.bf16.vlgmr.msra.gmra.mxu0 %vm205_vm0, %v406_v1  ;;  %399 = vmatmul.msk.bf16.vlgmr.msra.gmra.mxu1 %vm205_vm0, %v407_v2 }
  0x1a   : > { %400 = vmatmul.msk.bf16.vlgmr.msra.gmra.mxu2 %vm205_vm0, %v408_v3  ;;  %401 = vmatmul.msk.bf16.vlgmr.msra.gmra.mxu3 %vm205_vm0, %v409_v4  ;;  %p489_p0 = pneg %p488_p13  ;;  %p493_p3 = por %p492_p2, %p491_p1 }
  0x1c   : > { %v247_v45 = vld [vmem:[%s632_s5] sm:$0x1]  ;;  %v263_v48 = vld [vmem:[%s632_s5 + $0x1] sm:$0x1]  ;;  %p494_p5 = pnand %p493_p3, %p489_p0 }
  0x96   : > { %v227_v6 = vpop.f32.mrf.mxu0  ;;  %v232_v7 = vpop.f32.mrf.mxu1 }
  0x97   : > { %v264_v11 = vmul.f32 %v227_v6, %v227_v6  ;;  %v266_v15 = vmul.f32 %v232_v7, %v232_v7 }
  0x9d   : > { %v237_v8 = vpop.f32.mrf.mxu2  ;;  %v242_v9 = vpop.f32.mrf.mxu3 }
  0x9e   : > { %v229_v10 = vpop.f32.mrf.mxu0  ;;  %v234_v14 = vpop.f32.mrf.mxu1  ;;  %v268_v21 = vmul.f32 %v237_v8, %v237_v8  ;;  %v270_v29 = vmul.f32 %v242_v9, %v242_v9 }
  0x9f   : > { %v248_v12 = vadd.f32 %v229_v10, %v227_v6  ;;  %v265_v13 = vmul.f32 %v229_v10, %v229_v10  ;;  %v267_v19 = vmul.f32 %v234_v14, %v234_v14 }
  0xa1   : > { %v272_v16 = vadd.f32 %v265_v13, %v264_v11  ;;  %v249_v17 = vadd.f32 %v248_v12, %v232_v7 }
  0xa3   : > { %v250_v18 = vadd.f32 %v249_v17, %v234_v14  ;;  %v273_v20 = vadd.f32 %v272_v16, %v266_v15 }
  0xa5   : > { %v274_v22 = vadd.f32 %v273_v20, %v267_v19  ;;  %v239_v23 = vpop.f32.mrf.mxu2  ;;  %v251_v24 = vadd.f32 %v250_v18, %v237_v8  ;;  %v244_v28 = vpop.f32.mrf.mxu3 }
  0xa6   : > { %v269_v26 = vmul.f32 %v239_v23, %v239_v23  ;;  %v271_v33 = vmul.f32 %v244_v28, %v244_v28 }
  0xa7   : > { %v252_v25 = vadd.f32 %v251_v24, %v239_v23  ;;  %v275_v27 = vadd.f32 %v274_v22, %v268_v21 }
  0xa9   : > { %v276_v30 = vadd.f32 %v275_v27, %v269_v26  ;;  %v253_v31 = vadd.f32 %v252_v25, %v242_v9 }
  0xab   : > { %v254_v32 = vadd.f32 %v253_v31, %v244_v28  ;;  %v277_v34 = vadd.f32 %v276_v30, %v270_v29 }
  0xad   : > { %v255_v35 = vrot.slane %v254_v32, 4  ;;  %v278_v36 = vadd.f32 %v277_v34, %v271_v33 }
  0xaf   : > { %v256_v37 = vadd.f32 %v255_v35, %v254_v32  ;;  %v279_v38 = vrot.slane %v278_v36, 4 }
  0xb1   : > { %v257_v39 = vrot.slane %v256_v37, 2  ;;  %v280_v40 = vadd.f32 %v279_v38, %v278_v36 }
  0xb3   : > { %v258_v41 = vadd.f32 %v257_v39, %v256_v37  ;;  %v281_v42 = vrot.slane %v280_v40, 2 }
  0xb5   : > { %v259_v43 = vrot.slane %v258_v41, 1  ;;  %v282_v44 = vadd.f32 %v281_v42, %v280_v40 }
  0xb7   : > { %v260_v46 = vadd.f32 %v259_v43, %v258_v41  ;;  %v283_v47 = vrot.slane %v282_v44, 1 }
  0xb9   : > { %v261_v49 = vadd.f32 %v260_v46, %v247_v45  ;;  %v284_v50 = vadd.f32 %v283_v47, %v282_v44 }
  0xbb   : > { %v285_v51 = vadd.f32 %v284_v50, %v263_v48  ;;  %262 = vst [vmem:[%s632_s5] sm:$0x1] %v261_v49 }
  0xbd   : > { %286 = vst [vmem:[%s632_s5 + $0x1] sm:$0x1] %v285_v51 }
  0xbe   : > { %497 = shalt.err (!%p494_p5)
}
  0xbf   : > { %414 = dma.vmem_to_hbm [thread:$0]  (%p604_p4), %s301_s12, 128, %s303_s15, %s288_s16  }
  0xc0 PF: > { %p420_p6 = scmp.ge.s32.totalorder %s548_s14, 2  ;;  %s314_s28 = sand.u32 1, %s528_s9  }
  0xc1   : > { %s315_s29 = scalar_lea.sflag [#allocation3], %s314_s28 }
  0xc2   : > { %p417_p7 = pnand %p420_p6, %p611_p8 }
  0xc4   : > { %p418_p9 = pneg %p417_p7 }
  0xc6   : > { %523 = dma.done.wait (%p418_p9), %s315_s29, 128  }
  0xc7   : > { %525 = vsyncadd (%p418_p9), %s315_s29, 4294967168  ;;  %s15_s14 = sadd.s32 1, %s548_s14   ;;  %s683_s9 = smov %s532_s10 }
  0xc8   : > { %p12_p10 = scmp.ge.s32.totalorder %s15_s14, 4   ;;  %s684_s10 = smov %s536_s11 }
  0xc9   : > { %s685_s11 = smov %s617_s22  ;;  %s686_s12 = smov %s544_s13 }
  0xca   : > { %s687_s13 = smov %s689_s17  ;;  %14 = sbr.rel (!%p12_p10) target bundleno = 4 (0x4), region = 67 }
  0xcf   :  { %321 = vsyncpa [#allocation3], 1 }
  0xd0   :  { %323 = vsyncpa [#allocation3 + $0x1], 1 }

</bundles_post_ra>
